<compile_context>
chip_gen: v6e
topology: v6e:2x2x1
jax: 0.10.0
libtpu: 0.0.40
codegen_flags: <defaults>
</compile_context>

<pallas_src>
import functools

import jax
import jax.numpy as jnp
from jax.experimental import pallas as pl
from jax.experimental.pallas import tpu as pltpu

FEATURE_NUM = 11
HIDDEN = 2 * FEATURE_NUM            # 22
GATE_STRIDE = 32                    # each used gate padded to 32 sublanes
NUM_GATES_USED = 3                  # i, g, o (forget gate multiplies c0 == 0)
GATE_ROWS = NUM_GATES_USED * GATE_STRIDE   # 96
EPS = 1e-5


def _sigmoid_from_pre(z):
    # sigmoid(z) == 0.5 * tanh(0.5 * z) + 0.5  -> one EUP tanh + a VPU fma
    return 0.5 * jnp.tanh(0.5 * z) + 0.5


def _lstm_stats_kernel(x_ref, wg_ref, bg_ref, h1_ref, sum_ref, sumsq_ref,
                       *, total_b):
    """Pass 1: LSTM cell on one (11, TB) batch tile + BN stats accumulation."""
    i = pl.program_id(0)

    @pl.when(i == 0)
    def _():
        sum_ref[...] = jnp.zeros_like(sum_ref)
        sumsq_ref[...] = jnp.zeros_like(sumsq_ref)

    x = x_ref[...]                                            # (F, TB) f32

    # Single fused gate matmul: (96, 11) @ (11, TB) on the MXU.
    pre = jnp.dot(wg_ref[...], x,
                  preferred_element_type=jnp.float32) + bg_ref[...]

    # Gate slices sit at vreg-aligned sublane offsets 0 / 32 / 64.
    pre_i = pre[0:HIDDEN]
    pre_g = pre[GATE_STRIDE:GATE_STRIDE + HIDDEN]
    pre_o = pre[2 * GATE_STRIDE:2 * GATE_STRIDE + HIDDEN]

    i_g = _sigmoid_from_pre(pre_i)
    g_g = jnp.tanh(pre_g)
    o_g = _sigmoid_from_pre(pre_o)
    c1 = i_g * g_g                                            # f_gate * c0 == 0
    h1 = o_g * jnp.tanh(c1)                                   # (H, TB)
    h1_ref[...] = h1

    # BatchNorm statistics over the REAL batch rows only (mask padded lanes).
    tb = h1.shape[1]
    valid = total_b - i * tb
    cols = jax.lax.broadcasted_iota(jnp.int32, h1.shape, 1)
    hm = jnp.where(cols < valid, h1, 0.0)
    sum_ref[...] += jnp.sum(hm, axis=1, keepdims=True)        # (H, 1)
    sumsq_ref[...] += jnp.sum(hm * hm, axis=1, keepdims=True)  # (H, 1)


def _bn_relu_linear_kernel(h1_ref, sum_ref, sumsq_ref, gamma_ref, beta_ref,
                           wl_ref, bl_ref, out_ref, *, inv_n):
    """Pass 2: BatchNorm (folded into one fma) -> ReLU -> Linear, (2, TB) out."""
    mean = sum_ref[...] * inv_n                               # (H, 1)
    var = jnp.maximum(sumsq_ref[...] * inv_n - mean * mean, 0.0)  # biased var
    scale = gamma_ref[...] * jax.lax.rsqrt(var + EPS)
    shift = beta_ref[...] - mean * scale

    h = h1_ref[...]                                           # (H, TB)
    xr = jnp.maximum(h * scale + shift, 0.0)                  # BN + ReLU
    out_ref[...] = jnp.dot(wl_ref[...], xr,
                           preferred_element_type=jnp.float32) + bl_ref[...]


def init_params(key):
    """Deterministic init mirroring the module's parameter shapes."""
    ks = jax.random.split(key, 6)
    bound = 1.0 / jnp.sqrt(jnp.float32(HIDDEN))
    u = lambda k, shape: jax.random.uniform(k, shape, jnp.float32, -bound, bound)
    return {
        "w_ih": u(ks[0], (4 * HIDDEN, FEATURE_NUM)),   # lstm.weight_ih_l0
        "b_ih": u(ks[1], (4 * HIDDEN,)),               # lstm.bias_ih_l0
        "b_hh": u(ks[2], (4 * HIDDEN,)),               # lstm.bias_hh_l0
        # lstm.weight_hh_l0 exists in the module but never contributes (h0=0).
        "gamma": jnp.ones((HIDDEN,), jnp.float32),     # norm.weight
        "beta": jnp.zeros((HIDDEN,), jnp.float32),     # norm.bias
        "w_lin": u(ks[3], (2, HIDDEN)),                # linear1.weight
        "b_lin": u(ks[4], (2,)),                       # linear1.bias
    }


def lstm_rnn_forward(x, params, *, block_b=512):
    """block_b: batch rows per grid step (multiple of 128). 512 is a good
    default on all of v5e/v6e/v7x; VMEM use per step is far below every
    generation's scoped limit."""
    assert block_b % 128 == 0
    x2 = x.reshape(-1, FEATURE_NUM).astype(jnp.float32)       # (B, F)
    B = x2.shape[0]
    nb = pl.cdiv(B, block_b)
    b_pad = nb * block_b

    # Layout plumbing in the wrapper: pad batch, go feature-major.
    x_t = jnp.pad(x2, ((0, b_pad - B), (0, 0))).T             # (F, B_pad)

    # Pack only the contributing gates (i, g, o), padded to 32-row stride.
    w_ih = params["w_ih"].astype(jnp.float32)                 # (4H, F)
    b_all = (params["b_ih"] + params["b_hh"]).astype(jnp.float32)
    wg = jnp.zeros((GATE_ROWS, FEATURE_NUM), jnp.float32)
    bg = jnp.zeros((GATE_ROWS, 1), jnp.float32)
    for slot, gate in enumerate((0, 2, 3)):                   # PyTorch: i,f,g,o
        r0 = slot * GATE_STRIDE
        wg = wg.at[r0:r0 + HIDDEN].set(w_ih[gate * HIDDEN:(gate + 1) * HIDDEN])
        bg = bg.at[r0:r0 + HIDDEN, 0].set(b_all[gate * HIDDEN:(gate + 1) * HIDDEN])

    gamma = params["gamma"].reshape(HIDDEN, 1).astype(jnp.float32)
    beta = params["beta"].reshape(HIDDEN, 1).astype(jnp.float32)
    wl = params["w_lin"].astype(jnp.float32)                  # (2, H) as-is
    bl = params["b_lin"].reshape(2, 1).astype(jnp.float32)

    def cparams(sem):
        return pltpu.CompilerParams(dimension_semantics=(sem,),
                                    vmem_limit_bytes=32 * 1024 * 1024)

    # ---- Pass 1: LSTM cell -> h1 (feature-major) + BN sum / sum-of-squares.
    # Batch axis is "arbitrary": the stats outputs are resident accumulators.
    h1_t, s, sq = pl.pallas_call(
        functools.partial(_lstm_stats_kernel, total_b=B),
        out_shape=(jax.ShapeDtypeStruct((HIDDEN, b_pad), jnp.float32),
                   jax.ShapeDtypeStruct((HIDDEN, 1), jnp.float32),
                   jax.ShapeDtypeStruct((HIDDEN, 1), jnp.float32)),
        grid_spec=pltpu.PrefetchScalarGridSpec(
            num_scalar_prefetch=0, grid=(nb,),
            in_specs=[pl.BlockSpec((FEATURE_NUM, block_b), lambda i: (0, i)),
                      pl.BlockSpec((GATE_ROWS, FEATURE_NUM), lambda i: (0, 0)),
                      pl.BlockSpec((GATE_ROWS, 1), lambda i: (0, 0))],
            out_specs=[pl.BlockSpec((HIDDEN, block_b), lambda i: (0, i)),
                       pl.BlockSpec((HIDDEN, 1), lambda i: (0, 0)),
                       pl.BlockSpec((HIDDEN, 1), lambda i: (0, 0))]),
        compiler_params=cparams("arbitrary"),
    )(x_t, wg, bg)

    # ---- Pass 2: BN -> ReLU -> Linear.  Independent per tile -> "parallel"
    # (shards across v7x's two TensorCores).  Output is lane-dense (2, B_pad).
    out_t = pl.pallas_call(
        functools.partial(_bn_relu_linear_kernel, inv_n=1.0 / B),
        out_shape=jax.ShapeDtypeStruct((2, b_pad), jnp.float32),
        grid_spec=pltpu.PrefetchScalarGridSpec(
            num_scalar_prefetch=0, grid=(nb,),
            in_specs=[pl.BlockSpec((HIDDEN, block_b), lambda i: (0, i)),
                      pl.BlockSpec((HIDDEN, 1), lambda i: (0, 0)),
                      pl.BlockSpec((HIDDEN, 1), lambda i: (0, 0)),
                      pl.BlockSpec((HIDDEN, 1), lambda i: (0, 0)),
                      pl.BlockSpec((HIDDEN, 1), lambda i: (0, 0)),
                      pl.BlockSpec((2, HIDDEN), lambda i: (0, 0)),
                      pl.BlockSpec((2, 1), lambda i: (0, 0))],
            out_specs=pl.BlockSpec((2, block_b), lambda i: (0, i))),
        compiler_params=cparams("parallel"),
    )(h1_t, s, sq, gamma, beta, wl, bl)

    return out_t[:, :B].T                                     # (B, 2)


def reference_forward(x, params):
    """Pure-JAX reference for correctness checking (PyTorch semantics)."""
    x2 = x.reshape(-1, FEATURE_NUM).astype(jnp.float32)
    gates = x2 @ params["w_ih"].T + params["b_ih"] + params["b_hh"]
    i_g, f_g, g_g, o_g = jnp.split(gates, 4, axis=-1)
    c1 = jax.nn.sigmoid(i_g) * jnp.tanh(g_g)                  # c0 = 0
    h1 = jax.nn.sigmoid(o_g) * jnp.tanh(c1)
    mean = jnp.mean(h1, axis=0, keepdims=True)
    var = jnp.mean((h1 - mean) ** 2, axis=0, keepdims=True)   # biased variance
    xn = (h1 - mean) / jnp.sqrt(var + EPS) * params["gamma"] + params["beta"]
    xr = jnp.maximum(xn, 0.0)
    return xr @ params["w_lin"].T + params["b_lin"]


if __name__ == "__main__":
    key = jax.random.PRNGKey(0)
    k_param, k_x = jax.random.split(key)
    params = init_params(k_param)

    # Input consistent with forward's x.view(-1, 1, feature_num): (B, 11).
    # B=200 with block_b=128 exercises multi-tile stats accumulation and the
    # padded/masked last tile.
    B = 200
    x = jax.random.normal(k_x, (B, FEATURE_NUM), jnp.float32)

    out = lstm_rnn_forward(x, params, block_b=128)
    out = jax.block_until_ready(out)

    ref = reference_forward(x, params)
    assert out.shape == (B, 2)
    # Tolerance accounts for the tanh-based sigmoid and the sum/sum-sq
    # reformulation of the BN statistics (all still f32).
    assert jnp.allclose(out, ref, atol=1e-3, rtol=1e-3), \
        float(jnp.max(jnp.abs(out - ref)))

    print("KERNEL_OK")
</pallas_src>

<mosaic_0001>
module attributes {stable_mosaic.version = 11 : i64} {
  func.func @_lstm_stats_kernel(%arg0: i32, %arg1: memref<11x128xf32, #tpu.memory_space<vmem>>, %arg2: memref<96x11xf32, #tpu.memory_space<vmem>>, %arg3: memref<96x1xf32, #tpu.memory_space<vmem>>, %arg4: memref<22x128xf32, #tpu.memory_space<vmem>>, %arg5: memref<22x1xf32, #tpu.memory_space<vmem>>, %arg6: memref<22x1xf32, #tpu.memory_space<vmem>>) attributes {dimension_semantics = [#tpu.dimension_semantics<arbitrary>], iteration_bounds = array<i64: 2>, scalar_prefetch = 0 : i64, scratch_operands = 0 : i64, tpu.core_type = #tpu.core_type<tc>, window_params = [{transform_indices = @transform_0, window_bounds = array<i64: 11, 128>}, {pipeline_mode = #tpu.pipeline_mode<synchronous>, transform_indices = @transform_1, window_bounds = array<i64: 96, 11>}, {pipeline_mode = #tpu.pipeline_mode<synchronous>, transform_indices = @transform_2, window_bounds = array<i64: 96, 1>}, {transform_indices = @transform_3, window_bounds = array<i64: 22, 128>}, {pipeline_mode = #tpu.pipeline_mode<synchronous>, transform_indices = @transform_4, window_bounds = array<i64: 22, 1>}, {pipeline_mode = #tpu.pipeline_mode<synchronous>, transform_indices = @transform_5, window_bounds = array<i64: 22, 1>}]} {
    %c0_i32 = arith.constant 0 : i32
    %0 = arith.cmpi eq, %arg0, %c0_i32 : i32
    %1 = arith.extui %0 : i1 to i32
    %c0_i32_0 = arith.constant 0 : i32
    %2 = arith.cmpi ne, %1, %c0_i32_0 : i32
    scf.if %2 {
      %cst_25 = arith.constant 0.000000e+00 : f32
      %49 = vector.broadcast %cst_25 : f32 to vector<22x1xf32>
      %c0_26 = arith.constant 0 : index
      %c0_27 = arith.constant 0 : index
      %50 = vector.load %arg5[%c0_26, %c0_27] : memref<22x1xf32, #tpu.memory_space<vmem>>, vector<22x1xf32>
      tpu.vector_store %arg5[%c0_26, %c0_27], %49 {strides = array<i32>} : memref<22x1xf32, #tpu.memory_space<vmem>>, vector<22x1xf32>,
      %cst_28 = arith.constant 0.000000e+00 : f32
      %51 = vector.broadcast %cst_28 : f32 to vector<22x1xf32>
      %c0_29 = arith.constant 0 : index
      %c0_30 = arith.constant 0 : index
      %52 = vector.load %arg6[%c0_29, %c0_30] : memref<22x1xf32, #tpu.memory_space<vmem>>, vector<22x1xf32>
      tpu.vector_store %arg6[%c0_29, %c0_30], %51 {strides = array<i32>} : memref<22x1xf32, #tpu.memory_space<vmem>>, vector<22x1xf32>,
    } else {
    }
    %c0 = arith.constant 0 : index
    %c0_1 = arith.constant 0 : index
    %3 = vector.load %arg1[%c0, %c0_1] : memref<11x128xf32, #tpu.memory_space<vmem>>, vector<11x128xf32>
    %c0_2 = arith.constant 0 : index
    %c0_3 = arith.constant 0 : index
    %4 = vector.load %arg2[%c0_2, %c0_3] : memref<96x11xf32, #tpu.memory_space<vmem>>, vector<96x11xf32>
    %cst = arith.constant dense<0.000000e+00> : vector<96x128xf32>
    %5 = tpu.matmul %4, %3, %cst {dimension_numbers = #tpu.dot_dimension_numbers<[1], [0], [0], [1], [0, 0, 1, 1], [], []>} : vector<96x11xf32>, vector<11x128xf32>, vector<96x128xf32> -> vector<96x128xf32>
    %c0_4 = arith.constant 0 : index
    %c0_5 = arith.constant 0 : index
    %6 = vector.load %arg3[%c0_4, %c0_5] : memref<96x1xf32, #tpu.memory_space<vmem>>, vector<96x1xf32>
    %7 = vector.broadcast %6 : vector<96x1xf32> to vector<96x128xf32>
    %8 = arith.addf %5, %7 : vector<96x128xf32>
    %9 = vector.extract_strided_slice %8 {offsets = [0, 0], sizes = [22, 128], strides = [1, 1]} : vector<96x128xf32> to vector<22x128xf32>
    %10 = vector.extract_strided_slice %8 {offsets = [32, 0], sizes = [22, 128], strides = [1, 1]} : vector<96x128xf32> to vector<22x128xf32>
    %11 = vector.extract_strided_slice %8 {offsets = [64, 0], sizes = [22, 128], strides = [1, 1]} : vector<96x128xf32> to vector<22x128xf32>
    %cst_6 = arith.constant 5.000000e-01 : f32
    %12 = vector.broadcast %cst_6 : f32 to vector<22x128xf32>
    %13 = arith.mulf %12, %9 : vector<22x128xf32>
    %14 = math.tanh %13 : vector<22x128xf32>
    %cst_7 = arith.constant 5.000000e-01 : f32
    %15 = vector.broadcast %cst_7 : f32 to vector<22x128xf32>
    %16 = arith.mulf %15, %14 : vector<22x128xf32>
    %cst_8 = arith.constant 5.000000e-01 : f32
    %17 = vector.broadcast %cst_8 : f32 to vector<22x128xf32>
    %18 = arith.addf %16, %17 : vector<22x128xf32>
    %19 = math.tanh %10 : vector<22x128xf32>
    %cst_9 = arith.constant 5.000000e-01 : f32
    %20 = vector.broadcast %cst_9 : f32 to vector<22x128xf32>
    %21 = arith.mulf %20, %11 : vector<22x128xf32>
    %22 = math.tanh %21 : vector<22x128xf32>
    %cst_10 = arith.constant 5.000000e-01 : f32
    %23 = vector.broadcast %cst_10 : f32 to vector<22x128xf32>
    %24 = arith.mulf %23, %22 : vector<22x128xf32>
    %cst_11 = arith.constant 5.000000e-01 : f32
    %25 = vector.broadcast %cst_11 : f32 to vector<22x128xf32>
    %26 = arith.addf %24, %25 : vector<22x128xf32>
    %27 = arith.mulf %18, %19 : vector<22x128xf32>
    %28 = math.tanh %27 : vector<22x128xf32>
    %29 = arith.mulf %26, %28 : vector<22x128xf32>
    %c0_12 = arith.constant 0 : index
    %c0_13 = arith.constant 0 : index
    %30 = vector.load %arg4[%c0_12, %c0_13] : memref<22x128xf32, #tpu.memory_space<vmem>>, vector<22x128xf32>
    tpu.vector_store %arg4[%c0_12, %c0_13], %29 {strides = array<i32>} : memref<22x128xf32, #tpu.memory_space<vmem>>, vector<22x128xf32>,
    %c128_i32 = arith.constant 128 : i32
    %31 = arith.muli %arg0, %c128_i32 : i32
    %c200_i32 = arith.constant 200 : i32
    %32 = arith.subi %c200_i32, %31 : i32
    %33 = tpu.iota {dimensions = array<i32: 1>} : vector<22x128xi32>
    %34 = vector.broadcast %32 : i32 to vector<22x128xi32>
    %35 = arith.cmpi slt, %33, %34 : vector<22x128xi32>
    %cst_14 = arith.constant 0.000000e+00 : f32
    %36 = vector.broadcast %cst_14 : f32 to vector<22x128xf32>
    %37 = arith.select %35, %29, %36 : vector<22x128xi1>, vector<22x128xf32>
    %c0_15 = arith.constant 0 : index
    %c0_16 = arith.constant 0 : index
    %38 = vector.load %arg5[%c0_15, %c0_16] : memref<22x1xf32, #tpu.memory_space<vmem>>, vector<22x1xf32>
    %cst_17 = arith.constant dense<0.000000e+00> : vector<22xf32>
    %39 = vector.multi_reduction <add>, %37, %cst_17 [1] : vector<22x128xf32> to vector<22xf32>
    %40 = vector.shape_cast %39 : vector<22xf32> to vector<22x1xf32>
    %41 = arith.addf %38, %40 : vector<22x1xf32>
    %c0_18 = arith.constant 0 : index
    %c0_19 = arith.constant 0 : index
    %42 = vector.load %arg5[%c0_18, %c0_19] : memref<22x1xf32, #tpu.memory_space<vmem>>, vector<22x1xf32>
    tpu.vector_store %arg5[%c0_18, %c0_19], %41 {strides = array<i32>} : memref<22x1xf32, #tpu.memory_space<vmem>>, vector<22x1xf32>,
    %c0_20 = arith.constant 0 : index
    %c0_21 = arith.constant 0 : index
    %43 = vector.load %arg6[%c0_20, %c0_21] : memref<22x1xf32, #tpu.memory_space<vmem>>, vector<22x1xf32>
    %44 = arith.mulf %37, %37 : vector<22x128xf32>
    %cst_22 = arith.constant dense<0.000000e+00> : vector<22xf32>
    %45 = vector.multi_reduction <add>, %44, %cst_22 [1] : vector<22x128xf32> to vector<22xf32>
    %46 = vector.shape_cast %45 : vector<22xf32> to vector<22x1xf32>
    %47 = arith.addf %43, %46 : vector<22x1xf32>
    %c0_23 = arith.constant 0 : index
    %c0_24 = arith.constant 0 : index
    %48 = vector.load %arg6[%c0_23, %c0_24] : memref<22x1xf32, #tpu.memory_space<vmem>>, vector<22x1xf32>
    tpu.vector_store %arg6[%c0_23, %c0_24], %47 {strides = array<i32>} : memref<22x1xf32, #tpu.memory_space<vmem>>, vector<22x1xf32>,
    return
  }
  func.func @transform_0(%arg0: i32) -> (i32, i32) {
    %c0_i32 = arith.constant 0 : i32
    %c0_i32_0 = arith.constant 0 : i32
    return %c0_i32, %arg0 : i32, i32
  }
  func.func @transform_1(%arg0: i32) -> (i32, i32) {
    %c0_i32 = arith.constant 0 : i32
    %c0_i32_0 = arith.constant 0 : i32
    %c0_i32_1 = arith.constant 0 : i32
    return %c0_i32, %c0_i32_0 : i32, i32
  }
  func.func @transform_2(%arg0: i32) -> (i32, i32) {
    %c0_i32 = arith.constant 0 : i32
    %c0_i32_0 = arith.constant 0 : i32
    %c0_i32_1 = arith.constant 0 : i32
    return %c0_i32, %c0_i32_0 : i32, i32
  }
  func.func @transform_3(%arg0: i32) -> (i32, i32) {
    %c0_i32 = arith.constant 0 : i32
    %c0_i32_0 = arith.constant 0 : i32
    return %c0_i32, %arg0 : i32, i32
  }
  func.func @transform_4(%arg0: i32) -> (i32, i32) {
    %c0_i32 = arith.constant 0 : i32
    %c0_i32_0 = arith.constant 0 : i32
    %c0_i32_1 = arith.constant 0 : i32
    return %c0_i32, %c0_i32_0 : i32, i32
  }
  func.func @transform_5(%arg0: i32) -> (i32, i32) {
    %c0_i32 = arith.constant 0 : i32
    %c0_i32_0 = arith.constant 0 : i32
    %c0_i32_1 = arith.constant 0 : i32
    return %c0_i32, %c0_i32_0 : i32, i32
  }
}

</mosaic_0001>

<bundles_post_ra>
// kernel: tpu_custom_call.1
= control target key start
LH: loop header
LB: loop body
LE: loop exit
PB: predicated region body
PF: predicated region fallthrough
CT: control target
= control target key end

     0   :  { %11 = vsyncpa [#allocation4], 0  ;;  %s1183_s0 = inlined_call_operand.vmem [shape: f32[11,256], index: 0, kind: input, shape index: {}]   ;;  %s1184_s1 = inlined_call_operand.vmem [shape: f32[96,11], index: 1, kind: input, shape index: {}]   ;;  %s1185_s2 = inlined_call_operand.vmem [shape: f32[96,1], index: 2, kind: input, shape index: {}]   ;;  %s1186_s3 = inlined_call_operand.hbm [shape: f32[22,256], index: 3, kind: output, shape index: {0}]   ;;  %s1187_s4 = inlined_call_operand.vmem [shape: f32[22,1], index: 4, kind: output, shape index: {1}]   ;;  %s1188_s5 = inlined_call_operand.vmem [shape: f32[22,1], index: 5, kind: output, shape index: {2}]  }
   0x1   :  { %13 = vsyncpa [#allocation4 + $0x1], 0  ;;  %s928_s18 = smov 0   ;;  %s930_s19 = smov 0  }
   0x2   :  { %s932_s20 = smov 0   ;;  %s934_s21 = smov 0  }
   0x3 LB: > { %s949_s22 = sadd.s32 4294967295, %s890_s21   ;;  %s694_s23 = sadd.s32 4294967294, %s890_s21   ;;  %s890_s21 = sphi %s934_s21, %s1194_s21   ;;  %s886_s20 = sphi %s932_s20, %s1193_s20   ;;  %s882_s19 = sphi %s930_s19, %s1192_s19   ;;  %s878_s18 = sphi %s928_s18, %s1191_s18  }
   0x4   : > { %s953_s24 = sadd.s32 1, %s890_s21   ;;  %s26_s25 = sadd.s32 1, %s886_s20 }
   0x5   : > { %s23_s26 = ssub.s32 %s890_s21, %s953_s24  ;;  %p33_p0 = scmp.ne.s32.totalorder %s886_s20, %s882_s19 }
   0x6   : > { %p24_p1 = scmp.eq.s32.totalorder %s23_s26, 0  ;;  %p34_p2 = scmp.eq.s32.totalorder %s890_s21, 0 }
   0x7   : > { %p105_p3 = scmp.eq.s32.totalorder %s949_s22, 1  ;;  %p110_p4 = scmp.ne.s32.totalorder %s882_s19, %s878_s18 }
   0x8   : > { %s965_s27 = scalar_select %p24_p1, %s886_s20, %s26_s25  }
   0x9   : > { %p35_p5 = por %p34_p2, %p33_p0  ;;  %p967_p6 = por %p105_p3, %p33_p0 }
   0xa   : > { %p111_p7 = scmp.eq.s32.totalorder %s694_s23, 1  ;;  %p696_p9 = scmp.ge.s32.totalorder %s890_s21, 2 }
   0xc   : > { %p971_p8 = por %p111_p7, %p110_p4  ;;  %175 = sbr.rel (%p696_p9) target bundleno = 22 (0x16), region = 24 }
  0x11   : > { %178 = sbr.rel (!%p35_p5) target bundleno = 22 (0x16), region = 28  ;;  %s180_s30 = sand.u32 (%p35_p5), 1, %s886_s20  }
  0x12   : > { %s698_s6 = sshll.u32 (%p35_p5), %s890_s21, 3  ;;  %s697_s7 = sshll.u32 (%p35_p5), %s180_s30, 4 }
  0x13   : > { %s184_s10 = scalar_lea.vmem (%p35_p5), %s1183_s0, %s698_s6  ;;  %s182_s11 = scalar_lea.vmem (%p35_p5), [#allocation2], %s697_s7 }
  0x14   : > { %v215_v0 = vld [vmem:[%s184_s10] sm:$0xff] (%p35_p5)  ;;  %v217_v1 = vld [vmem:[%s184_s10 + $0x10] sm:$0xff] (%p35_p5) }
  0x15   : > { %216 = vst [vmem:[%s182_s11] sm:$0xff] (%p35_p5), %v215_v0  ;;  %218 = vst [vmem:[%s182_s11 + $0x8] sm:$0xff] (%p35_p5), %v217_v1 }
  0x16 PF: > { %p699_p10 = scmp.ge.s32.totalorder %s890_s21, 1  ;;  %p223_p11 = scmp.lt.s32.totalorder %s890_s21, 3 }
  0x18   : > { %p224_p12 = pnand %p699_p10, %p223_p11 }
  0x19   : > { %s986_s12 = sand.u32 (!%p224_p12), 1, %s882_s19   ;;  %p701_p13 = scmp.ne.s32.totalorder (!%p224_p12), %s949_s22, 0 }
  0x1a   : > { %227 = sbr.rel (%p224_p12) target bundleno = 433 (0x1b1), region = 66  ;;  %s700_s13 = sshll.u32 (!%p224_p12), %s986_s12, 4 }
  0x1b   : > { %s759_s14 = smul.u32 (!%p224_p12), 24, %s986_s12  ;;  %s232_s15 = scalar_lea.vmem (!%p224_p12), [#allocation2], %s700_s13 }
  0x1d   : > { %s990_s16 = scalar_lea.vmem (!%p224_p12), [#allocation3], %s759_s14 }
  0x1f   : > { %260 = sbr.rel (%p701_p13) target bundleno = 40 (0x28), region = 74 }
  0x24   : > { %vm261_vm0 = vcmask 7168   ;;  %vm264_vm1 = vcmask 5120   ;;  %v892_v2 = vmov 0.0  }
  0x25   : > { %262 = vst.msk [vmem:[%s1187_s4] sm:$0xff] %vm261_vm0, %v892_v2  ;;  %263 = vst.msk [vmem:[%s1187_s4 + $0x8] sm:$0xff] %vm261_vm0, %v892_v2 }
  0x26   : > { %266 = vst.msk [vmem:[%s1188_s5] sm:$0xff] %vm261_vm0, %v892_v2  ;;  %267 = vst.msk [vmem:[%s1188_s5 + $0x8] sm:$0xff] %vm261_vm0, %v892_v2 }
  0x27   : > { %265 = vst.msk [vmem:[%s1187_s4 + $0x10] sm:$0x3f] %vm264_vm1, %v892_v2  ;;  %268 = vst.msk [vmem:[%s1188_s5 + $0x10] sm:$0x3f] %vm264_vm1, %v892_v2 }
  0x28 PF: > { %v270_v3 = vld [vmem:[%s232_s15 + $0x8] sm:$0x7]  ;;  %vm389_vm2 = vcmask 1042432   ;;  %v269_v4 = vld [vmem:[%s232_s15] sm:$0xff]  ;;  %vm352_vm3 = vcmask 89088   ;;  %v893_v17 = vmov 0  }
  0x29   : > { %733 = vmatprep.subr.msk.mxu0 %vm389_vm2, %v270_v3  ;;  %755 = vmatprep.subr.msk.mxu1 %vm389_vm2, %v270_v3  ;;  %v271_v5 = vld [vmem:[%s1184_s1] sm:$0xff]  ;;  %v277_v6 = vld [vmem:[%s1184_s1 + $0x30] sm:$0xff]  ;;  %v272_v7 = vld [vmem:[%s1184_s1 + $0x8] sm:$0xff]  ;;  %s715_s14 = sshll.u32 %s949_s22, 7  ;;  %vm570_vm5 = vcmask 1045504   ;;  %s614_s30 = sshll.u32 %s990_s16, 4  ;;  %s1100_s30 = int_to_ptr.vmem [resolvable:$true] %s614_s30 }
  0x2a   : > { %734 = vmatpush3.msk.msra.mxu0 %vm389_vm2, %v270_v3  ;;  %757 = vmatpush3.msk.msra.mxu1 %vm389_vm2, %v270_v3  ;;  %v278_v8 = vld [vmem:[%s1184_s1 + $0x38] sm:$0xff]  ;;  %v273_v9 = vld [vmem:[%s1184_s1 + $0x10] sm:$0xff]  ;;  %v279_v10 = vld [vmem:[%s1184_s1 + $0x40] sm:$0xff]  ;;  %s555_s17 = ssub.s32 200, %s715_s14  ;;  %s1097_s26 = scalar_lea.hbm %s1186_s3, %s715_s14 }
  0x2b   : > { %735 = vmatprep.subr.mxu0 %v269_v4  ;;  %756 = vmatprep.subr.mxu1 %v269_v4  ;;  %v285_v11 = vld [vmem:[%s1185_s2 + $0x10] sm:$0xff]  ;;  %v284_v12 = vld [vmem:[%s1185_s2 + $0x8] sm:$0xff]  ;;  %v274_v13 = vld [vmem:[%s1184_s1 + $0x18] sm:$0xff]  ;;  %s602_s15 = scalar_lea.sflag [#allocation4], %s986_s12  ;;  %s830_s6 = scalar_lea.vmem %s1100_s30, 384 }
  0x2c   : > { %736 = vmatpush3.msra.mxu0 %v269_v4  ;;  %758 = vmatpush3.msra.mxu1 %v269_v4  ;;  %v280_v14 = vld [vmem:[%s1184_s1 + $0x48] sm:$0xff]  ;;  %v275_v15 = vld [vmem:[%s1184_s1 + $0x20] sm:$0xff]  ;;  %v281_v16 = vld [vmem:[%s1184_s1 + $0x50] sm:$0xff]  ;;  %p831_p0 = scmp.ne.s32.totalorder %s1100_s30, %s830_s6  ;;  %s894_s7 = smov [#allocation3]  }
  0x2d   : > { %737 = vmatprep.mubr.msk.f32.mxu0 %vm352_vm3, %v271_v5  ;;  %746 = vmatprep.mubr.msk.f32.mxu1 %vm352_vm3, %v277_v6  ;;  %v283_v18 = vld [vmem:[%s1185_s2] sm:$0xff]  ;;  %v289_v19 = vld [vmem:[%s1185_s2 + $0x30] sm:$0xff]  ;;  %v276_v20 = vld [vmem:[%s1184_s1 + $0x28] sm:$0xff]  ;;  %s834_s8 = sshll.u32 %s894_s7, 4  ;;  %s835_s8 = int_to_ptr.vmem [resolvable:$false] %s834_s8 }
  0x2e   : > { %738 = vmatmul.mubr.msk.f32.vlgmr.msra.gmra.mxu0 %vm352_vm3, %v272_v7  ;;  %747 = vmatmul.mubr.msk.f32.vlgmr.msra.gmra.mxu1 %vm352_vm3, %v278_v8  ;;  %v282_v21 = vld [vmem:[%s1184_s1 + $0x58] sm:$0xff]  ;;  %v287_v22 = vld [vmem:[%s1185_s2 + $0x20] sm:$0xff]  ;;  %v288_v23 = vld [vmem:[%s1185_s2 + $0x28] sm:$0xff]  ;;  %p832_p1 = pnand %p831_p0, %p967_p6  ;;  %s836_s22 = scalar_lea.vmem %s835_s8, 768 }
  0x2f   : > { %740 = vmatprep.mubr.msk.f32.mxu0 %vm352_vm3, %v273_v9  ;;  %749 = vmatprep.mubr.msk.f32.mxu1 %vm352_vm3, %v279_v10  ;;  %v293_v24 = vld [vmem:[%s1185_s2 + $0x50] sm:$0xff]  ;;  %v291_v25 = vld [vmem:[%s1185_s2 + $0x40] sm:$0xff]  ;;  %v292_v26 = vld [vmem:[%s1185_s2 + $0x48] sm:$0xff]  ;;  %p837_p3 = scmp.lt.s32.totalorder %s1100_s30, %s835_s8  ;;  %p838_p4 = scmp.lt.s32.totalorder %s836_s22, %s830_s6 }
  0x30   : > { %804 = vset.pattern.permute.xlu0 %v893_v17  ;;  %805 = vset.pattern.permute.xlu1 %v893_v17  ;;  %p833_p2 = pneg %p832_p1 }
  0x31   : > { %307 = vperm.xlu0 %804, %v285_v11   ;;  %302 = vperm.xlu1 %805, %v284_v12   ;;  %p839_p5 = por %p838_p4, %p837_p3 }
  0x32   : > { %741 = vmatmul.mubr.msk.f32.gmra.mxu0 %vm352_vm3, %v274_v13  ;;  %750 = vmatmul.mubr.msk.f32.gmra.mxu1 %vm352_vm3, %v280_v14 }
  0x33   : > { %743 = vmatprep.mubr.msk.f32.mxu0 %vm352_vm3, %v275_v15  ;;  %752 = vmatprep.mubr.msk.f32.mxu1 %vm352_vm3, %v281_v16  ;;  %v556_v15 = vlaneseq  ;;  %p840_p7 = pnand %p839_p5, %p833_p2 }
  0x35   : > { %297 = vperm.xlu0 %804, %v283_v18   ;;  %326 = vperm.xlu1 %805, %v289_v19   ;;  %v557_v19 = vand.u32 127, %v556_v15 }
  0x36   : > { %744 = vmatmul.mubr.msk.f32.gmra.mxu0 %vm352_vm3, %v276_v20  ;;  %753 = vmatmul.mubr.msk.f32.gmra.mxu1 %vm352_vm3, %v282_v21 }
  0x39   : > { %316 = vperm.xlu0 %804, %v287_v22   ;;  %321 = vperm.xlu1 %805, %v288_v23   ;;  %v558_v22 = vstv %s555_s17 }
  0x3a   : > { %vm559_vm4 = vcmp.lt.s32.totalorder %v557_v19, %v558_v22 }
  0x3d   : > { %345 = vperm.xlu0 %804, %v293_v24   ;;  %335 = vperm.xlu1 %805, %v291_v25  }
  0x41   : > { %340 = vperm.xlu0 %804, %v292_v26  }
  0xac   : > { %v308_v27 = vpop.permute.xlu0 %307  ;;  %v303_v29 = vpop.permute.xlu1 %302 }
  0xb0   : > { %v298_v28 = vpop.permute.xlu0 %297  ;;  %v327_v33 = vpop.permute.xlu1 %326 }
  0xb4   : > { %v317_v30 = vpop.permute.xlu0 %316  ;;  %v322_v45 = vpop.permute.xlu1 %321 }
  0xb8   : > { %v346_v41 = vpop.permute.xlu0 %345  ;;  %v336_v56 = vpop.permute.xlu1 %335 }
  0xbc   : > { %v341_v54 = vpop.permute.xlu0 %340 }
  0xee   : > { %v739_v31 = vpop.f32.mrf.mxu0  ;;  %v748_v32 = vpop.f32.mrf.mxu1 }
  0xef   : > { %v465_v34 = vadd.f32 %v739_v31, %v303_v29 }
  0xf0   : > { %v459_v35 = vpop.f32.mrf.mxu0  ;;  %v488_v36 = vpop.f32.mrf.mxu1 }
  0xf1   : > { %v516_v37 = vmul.f32 0.5, %v465_v34  ;;  %v460_v38 = vadd.f32 %v459_v35, %v298_v28  ;;  %v489_v52 = vadd.f32 %v488_v36, %v327_v33 }
  0xf2   : > { %v742_v39 = vpop.f32.mrf.mxu0  ;;  %v751_v40 = vpop.f32.mrf.mxu1 }
  0xf3   : > { %806 = vtanh.f32 %v516_v37  ;;  %v515_v42 = vmul.f32 0.5, %v460_v38  ;;  %v503_v57 = vadd.f32 %v751_v40, %v341_v54 }
  0xf4   : > { %v469_v43 = vpop.f32.mrf.mxu0  ;;  %v497_v44 = vpop.f32.mrf.mxu1 }
  0xf5   : > { %808 = vtanh.f32 %v515_v42  ;;  %v470_v46 = vadd.f32 %v469_v43, %v308_v27  ;;  %v498_v58 = vadd.f32 %v497_v44, %v336_v56  ;;  %v531_v60 = vmul.f32 0.5, %v503_v57 }
  0xf6   : > { %v745_v47 = vpop.f32.mrf.mxu0  ;;  %v754_v48 = vpop.f32.mrf.mxu1 }
  0xf7   : > { %v517_v49 = vmul.f32 0.5, %v470_v46  ;;  %v484_v50 = vadd.f32 %v745_v47, %v322_v45  ;;  %v530_v62 = vmul.f32 0.5, %v498_v58 }
  0xf8   : > { %v478_v51 = vpop.f32.mrf.mxu0  ;;  %v507_v55 = vpop.f32.mrf.mxu1 }
  0xf9   : > { %810 = vtanh.f32 %v517_v49  ;;  %v479_v53 = vadd.f32 %v478_v51, %v317_v30  ;;  %v508_v59 = vadd.f32 %v507_v55, %v346_v41 }
  0xfa   : > { %812 = vtanh.f32 %v484_v50 }
  0xfb   : > { %814 = vtanh.f32 %v479_v53  ;;  %v532_v63 = vmul.f32 0.5, %v508_v59 }
  0xfc   : > { %816 = vtanh.f32 %v489_v52 }
  0xfd   : > { %818 = vtanh.f32 %v531_v60 }
  0xfe   : > { %820 = vtanh.f32 %v530_v62 }
  0xff   : > { %822 = vtanh.f32 %v532_v63 }
 0x100   : > { %v807_v61 = vpop.eup %806 }
 0x101   : > { %v522_v1 = vmul.f32 0.5, %v807_v61 }
 0x102   : > { %v809_v0 = vpop.eup %808 }
 0x103   : > { %v521_v2 = vmul.f32 0.5, %v809_v0  ;;  %v525_v4 = vadd.f32 0.5, %v522_v1 }
 0x105   : > { %v524_v7 = vadd.f32 0.5, %v521_v2 }
 0x106   : > { %v811_v3 = vpop.eup %810 }
 0x107   : > { %v523_v5 = vmul.f32 0.5, %v811_v3  ;;  %v813_v6 = vpop.eup %812 }
 0x108   : > { %v815_v8 = vpop.eup %814  ;;  %v543_v10 = vmul.f32 %v813_v6, %v525_v4 }
 0x109   : > { %v526_v9 = vadd.f32 0.5, %v523_v5  ;;  %v817_v11 = vpop.eup %816  ;;  %v542_v12 = vmul.f32 %v815_v8, %v524_v7 }
 0x10a   : > { %824 = vtanh.f32 %v543_v10  ;;  %v819_v14 = vpop.eup %818 }
 0x10b   : > { %v544_v13 = vmul.f32 %v817_v11, %v526_v9  ;;  %826 = vtanh.f32 %v542_v12  ;;  %v821_v16 = vpop.eup %820  ;;  %v537_v18 = vmul.f32 0.5, %v819_v14 }
 0x10c   : > { %v823_v17 = vpop.eup %822  ;;  %v536_v20 = vmul.f32 0.5, %v821_v16 }
 0x10d   : > { %828 = vtanh.f32 %v544_v13  ;;  %v538_v21 = vmul.f32 0.5, %v823_v17  ;;  %v540_v23 = vadd.f32 0.5, %v537_v18 }
 0x10e   : > { %v539_v25 = vadd.f32 0.5, %v536_v20 }
 0x10f   : > { %v541_v28 = vadd.f32 0.5, %v538_v21 }
 0x117   : > { %v825_v24 = vpop.eup %824 }
 0x118   : > { %v827_v26 = vpop.eup %826  ;;  %v549_v27 = vmul.f32 %v825_v24, %v540_v23 }
 0x119   : > { %v548_v30 = vmul.f32 %v827_v26, %v539_v25 }
 0x11a   : > { %v829_v29 = vpop.eup %828  ;;  %v561_v31 = vsel %vm559_vm4, %v549_v27, 0.0  ;;  %552 = vst [vmem:[%s990_s16 + $0x8] sm:$0xff] %v549_v27 }
 0x11b   : > { %v550_v32 = vmul.f32 %v829_v29, %v541_v28  ;;  %568 = vadd.xlane.f32.xlu0 %v561_v31  ;;  %v560_v33 = vsel %vm559_vm4, %v548_v30, 0.0  ;;  %551 = vst [vmem:[%s990_s16] sm:$0xff] %v548_v30  ;;  %v586_v38 = vmul.f32 %v561_v31, %v561_v31 }
 0x11c   : > { %566 = vadd.xlane.f32.xlu1 %v560_v33  ;;  %v585_v36 = vmul.f32 %v560_v33, %v560_v33 }
 0x11d   : > { %v562_v34 = vsel %vm559_vm4, %v550_v32, 0.0  ;;  %553 = vst [vmem:[%s990_s16 + $0x10] sm:$0x3f] %v550_v32 }
 0x11e   : > { %v571_v35 = vsel %vm570_vm5, %v562_v34, 0.0  ;;  %v587_v37 = vmul.f32 %v562_v34, %v562_v34 }
 0x11f   : > { %572 = vadd.xlane.f32.xlu0 %v571_v35 }
 0x120   : > { %588 = vadd.xlane.f32.xlu1 %v585_v36  ;;  %v592_v39 = vsel %vm570_vm5, %v587_v37, 0.0 }
 0x123   : > { %590 = vadd.xlane.f32.xlu0 %v586_v38 }
 0x124   : > { %593 = vadd.xlane.f32.xlu1 %v592_v39 }
 0x125   : > { %843 = shalt.err (!%p840_p7)
}
 0x126   : > { %s844_s16 = scalar_lea.hbm %s1097_s26, 384  ;;  %s848_s11 = scalar_lea.hbm %s1186_s3, 768 }
 0x127   : > { %p845_p10 = scmp.ne.s32.totalorder %s1097_s26, %s844_s16  ;;  %p849_p13 = scmp.lt.s32.totalorder %s1097_s26, %s1186_s3 }
 0x128   : > { %p850_p0 = scmp.lt.s32.totalorder %s848_s11, %s844_s16 }
 0x129   : > { %p846_p11 = pnand %p845_p10, %p967_p6 }
 0x12a   : > { %p851_p1 = por %p850_p0, %p849_p13 }
 0x12b   : > { %p847_p12 = pneg %p846_p11 }
 0x12d   : > { %p852_p2 = pnand %p851_p1, %p847_p12 }
 0x12f   : > { %855 = shalt.err (!%p852_p2)
}
 0x130   : > { %s895_s17 = smov 128   ;;  %s896_s23 = smov 256   ;;  %v564_v40 = vld [vmem:[%s1187_s4 + $0x8] sm:$0xff]  ;;  %v563_v41 = vld [vmem:[%s1187_s4] sm:$0xff]  ;;  %vm577_vm6 = vcmask 7168   ;;  %vm580_vm7 = vcmask 5120  }
 0x131   : > { %s897_s25 = smov 8   ;;  %v565_v46 = vld [vmem:[%s1187_s4 + $0x10] sm:$0x3f]  ;;  %v582_v47 = vld [vmem:[%s1188_s5] sm:$0xff]  ;;  %v583_v52 = vld [vmem:[%s1188_s5 + $0x8] sm:$0xff] }
 0x132   : > { %760 = dma.vmem_to_hbm [thread:$0]  (%p967_p6), %s1100_s30, 384, %s1097_s26, %s602_s15, %s895_s17, %s896_s23, %s897_s25  }
 0x133   : > { %v584_v53 = vld [vmem:[%s1188_s5 + $0x10] sm:$0x3f] }
 0x1a4   : > { %v569_v42 = vpop.xlane.xlu0 %568 }
 0x1a5   : > { %v575_v43 = vadd.f32 %v569_v42, %v564_v40  ;;  %v567_v44 = vpop.xlane.xlu1 %566 }
 0x1a6   : > { %v574_v45 = vadd.f32 %v567_v44, %v563_v41 }
 0x1a7   : > { %579 = vst.msk [vmem:[%s1187_s4 + $0x8] sm:$0xff] %vm577_vm6, %v575_v43 }
 0x1a8   : > { %578 = vst.msk [vmem:[%s1187_s4] sm:$0xff] %vm577_vm6, %v574_v45  ;;  %v573_v48 = vpop.xlane.xlu0 %572 }
 0x1a9   : > { %v576_v49 = vadd.f32 %v573_v48, %v565_v46  ;;  %v589_v50 = vpop.xlane.xlu1 %588 }
 0x1aa   : > { %v595_v51 = vadd.f32 %v589_v50, %v582_v47 }
 0x1ab   : > { %581 = vst.msk [vmem:[%s1187_s4 + $0x10] sm:$0x3f] %vm580_vm7, %v576_v49 }
 0x1ac   : > { %598 = vst.msk [vmem:[%s1188_s5] sm:$0xff] %vm577_vm6, %v595_v51  ;;  %v591_v54 = vpop.xlane.xlu0 %590 }
 0x1ad   : > { %v596_v55 = vadd.f32 %v591_v54, %v583_v52  ;;  %v594_v56 = vpop.xlane.xlu1 %593 }
 0x1ae   : > { %v597_v57 = vadd.f32 %v594_v56, %v584_v53 }
 0x1af   : > { %599 = vst.msk [vmem:[%s1188_s5 + $0x8] sm:$0xff] %vm577_vm6, %v596_v55 }
 0x1b0   : > { %600 = vst.msk [vmem:[%s1188_s5 + $0x10] sm:$0x3f] %vm580_vm7, %v597_v57 }
 0x1b1 PF: > { %s641_s28 = sand.u32 1, %s878_s18   ;;  %p763_p6 = pnand %p696_p9, %p971_p8 }
 0x1b2   : > { %s642_s12 = scalar_lea.sflag [#allocation4], %s641_s28 }
 0x1b3   : > { %p764_p3 = pneg %p763_p6 }
 0x1b5   : > { %873 = dma.done.wait (%p764_p3), %s642_s12, 384  }
 0x1b6   : > { %875 = vsyncadd (%p764_p3), %s642_s12, 4294966912  ;;  %p16_p4 = scmp.ge.s32.totalorder %s953_s24, 4   ;;  %s1191_s18 = smov %s882_s19 }
 0x1b7   : > { %s1192_s19 = smov %s886_s20  ;;  %s1193_s20 = smov %s965_s27 }
 0x1b8   : > { %s1194_s21 = smov %s953_s24  ;;  %18 = sbr.rel (!%p16_p4) target bundleno = 3 (0x3), region = 130 }
 0x1bd   :  { %647 = vsyncpa [#allocation4], 1 }
 0x1be   :  { %649 = vsyncpa [#allocation4 + $0x1], 1 }

</bundles_post_ra>
